<compile_context>
chip_gen: v5e
topology: v5e:2x2
jax: 0.10.0
libtpu: 0.0.40
codegen_flags: <defaults>
</compile_context>

<pallas_src>
import functools

import jax
import jax.numpy as jnp
import numpy as np
from jax import lax
from jax.experimental import pallas as pl
from jax.experimental.pallas import tpu as pltpu


# ----------------------------------------------------------------------------
# Pallas kernel: upsample(x1) + pad + concat(x2) + (conv3x3 -> BN -> ReLU) x 2
# Layout inside the kernel: (channels, H*W), spatial on the 128-lane axis.
# ----------------------------------------------------------------------------
def _u_up_kernel(x2_ref, x1_ref, b_up_ref, w1_ref, b1_ref, w2_ref, b2_ref,
                 out_ref, xpad_ref, ypad_ref, xcol1_ref, xcol2_ref,
                 *, H, W, C2, C1, M):
    # x2_ref   : (C2, P)        skip-connection features, flattened spatial
    # x1_ref   : (C1, Ps)       low-res features, flattened spatial
    # b_up_ref : (Ps, P)        bilinear-upsample + F.pad operator (f32)
    # w1_ref   : (Cmid, 9*Cin)  conv1 taps with BN scale folded in
    # b1_ref   : (Cmid, 1)      conv1 folded bias
    # w2_ref   : (Cout, 9*Cmid) conv2 taps with BN scale folded in
    # b2_ref   : (Cout, 1)      conv2 folded bias
    # out_ref  : (Cout, P)      lane-dense output tile (P multiple of 128)
    # xpad_ref : (Cin,  2M+P)   flat image with zero margins (conv1 input)
    # ypad_ref : (Cmid, 2M+P)   flat image with zero margins (conv2 input)
    # xcol1_ref: (9*Cin,  P)    im2col scratch for conv1
    # xcol2_ref: (9*Cmid, P)    im2col scratch for conv2
    P = H * W
    Cin = C2 + C1
    Cmid = ypad_ref.shape[0]
    f32 = jnp.float32

    # ---- bilinear 2x upsample + asymmetric F.pad of x1: one small matmul ----
    x1u = jnp.dot(x1_ref[...].astype(f32), b_up_ref[...],
                  preferred_element_type=f32)                       # (C1, P)

    # ---- channel concat [x2 ; up(x1)] directly into the padded flat image ----
    # Flat row layout: [ zero margin M | image P | zero margin M ].  Margins are
    # rewritten every step (cheap: 128 aligned lanes per side); a zero-once-at-
    # program_id==0 init would be wrong when the parallel batch axis is sharded
    # across TensorCores (per-core scratch).
    xpad_ref[:, 0:M] = jnp.zeros((Cin, M), f32)
    xpad_ref[:, M + P:] = jnp.zeros((Cin, M), f32)
    xpad_ref[0:C2, M:M + P] = x2_ref[...].astype(f32)
    xpad_ref[C2:Cin, M:M + P] = x1u

    ypad_ref[:, 0:M] = jnp.zeros((Cmid, M), f32)
    ypad_ref[:, M + P:] = jnp.zeros((Cmid, M), f32)

    # ---- border masks (columns only; row over-reads land in the zero margins)
    col = lax.broadcasted_iota(jnp.int32, (1, P), 1) % W
    keep_l = col >= 1          # reading column w-1 is valid (ox = -1 taps)
    keep_r = col <= W - 2      # reading column w+1 is valid (ox = +1 taps)

    def build_im2col(src_ref, xcol_ref, c):
        # Flattened im2col: tap (oy, ox) is a lane-offset slice of the
        # zero-margined flat image plus a column mask.  Lane-axis only; no
        # (8,128)-crossing window slices / reshapes.
        t = 0
        for oy in (-1, 0, 1):
            for ox in (-1, 0, 1):
                s = oy * W + ox
                slab = src_ref[:, M + s:M + s + P]                  # (c, P)
                if ox == -1:
                    slab = jnp.where(keep_l, slab, jnp.zeros_like(slab))
                elif ox == 1:
                    slab = jnp.where(keep_r, slab, jnp.zeros_like(slab))
                xcol_ref[t * c:(t + 1) * c, :] = slab
                t += 1

    dot_dt = w1_ref.dtype   # bf16 in the perf config, f32 in the exact check

    # ---- conv1 -> BN (folded) -> ReLU : single MXU dot -----------------------
    build_im2col(xpad_ref, xcol1_ref, Cin)
    y1 = jnp.dot(w1_ref[...], xcol1_ref[...].astype(dot_dt),
                 preferred_element_type=f32)                        # (Cmid, P)
    y1 = jnp.maximum(y1 + b1_ref[...], 0.0)

    # ---- conv2 -> BN (folded) -> ReLU : single MXU dot -----------------------
    ypad_ref[:, M:M + P] = y1
    build_im2col(ypad_ref, xcol2_ref, Cmid)
    y2 = jnp.dot(w2_ref[...], xcol2_ref[...].astype(dot_dt),
                 preferred_element_type=f32)                        # (Cout, P)
    y2 = jnp.maximum(y2 + b2_ref[...], 0.0)

    # ---- lane-dense store: (Cout, H*W), H*W multiple of 128 ------------------
    out_ref[...] = y2.astype(out_ref.dtype)


# ----------------------------------------------------------------------------
# Wrapper helpers (all static-shape, host-side parameter prep)
# ----------------------------------------------------------------------------
def _bilinear_matrix(n_in, n_out):
    """(n_out, n_in) interpolation matrix, torch Upsample(align_corners=True)."""
    if n_in == 1:
        return jnp.ones((n_out, 1), jnp.float32)
    src = np.arange(n_out, dtype=np.float64) * (n_in - 1) / (n_out - 1)
    i0 = np.clip(np.floor(src).astype(np.int64), 0, n_in - 2)
    f = src - i0
    a = np.zeros((n_out, n_in), np.float64)
    a[np.arange(n_out), i0] += 1.0 - f
    a[np.arange(n_out), i0 + 1] += f
    return jnp.asarray(a, jnp.float32)


def _build_upsample_pad_matrix(Hs, Ws, H2, W2):
    """(Hs*Ws, H2*W2) operator: bilinear 2x upsample + F.pad((diffY,0,diffX,0))."""
    diffX = H2 - 2 * Hs   # zero rows added at the TOP of the H axis
    diffY = W2 - 2 * Ws   # zero cols added at the LEFT of the W axis
    R = jnp.concatenate(
        [jnp.zeros((diffX, Hs), jnp.float32), _bilinear_matrix(Hs, 2 * Hs)], 0)
    Cm = jnp.concatenate(
        [jnp.zeros((diffY, Ws), jnp.float32), _bilinear_matrix(Ws, 2 * Ws)], 0)
    # B[i*Ws+j, h*W2+w] = R[h, i] * Cm[w, j]
    return jnp.einsum("hi,wj->ijhw", R, Cm).reshape(Hs * Ws, H2 * W2)


def _fold_conv_weights(w_hwio, sb, dot_dtype):
    """Fold BN scale into the conv taps; returns ((Cout, 9*Cin), (Cout, 1))."""
    scale, bias = sb[0], sb[1]
    cin, cout = w_hwio.shape[2], w_hwio.shape[3]
    # k index = (ky*3 + kx)*Cin + ci  -- must match the kernel's tap order.
    wmat = jnp.transpose(w_hwio, (3, 0, 1, 2)).reshape(cout, 9 * cin)
    wmat = wmat * scale[:, None]
    return wmat.astype(dot_dtype), bias.reshape(cout, 1).astype(jnp.float32)


def u_up_pallas(x1, x2, params, *, dot_dtype=jnp.bfloat16):
    """Full U_up.forward as one Pallas call.  x1:(N,C1,Hs,Ws), x2:(N,C2,H,W)."""
    N, C1, Hs, Ws = x1.shape
    N2, C2, H, W = x2.shape
    assert N == N2
    Cin = C1 + C2
    P, Ps = H * W, Hs * Ws
    M = ((W + 1 + 127) // 128) * 128          # aligned zero margin (>= W+1)

    w1m, b1 = _fold_conv_weights(params["w1_hwio"], params["sb1"], dot_dtype)
    w2m, b2 = _fold_conv_weights(params["w2_hwio"], params["sb2"], dot_dtype)
    Cmid, Cout = w1m.shape[0], w2m.shape[0]

    b_up = _build_upsample_pad_matrix(Hs, Ws, H, W)       # (Ps, P) f32

    # NCHW -> (N, C, H*W) are free reshapes: no HBM transpose passes.
    x1f = x1.reshape(N, C1, Ps)
    x2f = x2.reshape(N, C2, P)

    kernel = functools.partial(_u_up_kernel, H=H, W=W, C2=C2, C1=C1, M=M)

    out = pl.pallas_call(
        kernel,
        out_shape=jax.ShapeDtypeStruct((N, Cout, P), jnp.float32),
        grid_spec=pltpu.PrefetchScalarGridSpec(
            num_scalar_prefetch=0,
            grid=(N,),
            in_specs=[
                pl.BlockSpec((None, C2, P), lambda n: (n, 0, 0)),
                pl.BlockSpec((None, C1, Ps), lambda n: (n, 0, 0)),
                pl.BlockSpec((Ps, P), lambda n: (0, 0)),
                pl.BlockSpec((Cmid, 9 * Cin), lambda n: (0, 0)),
                pl.BlockSpec((Cmid, 1), lambda n: (0, 0)),
                pl.BlockSpec((Cout, 9 * Cmid), lambda n: (0, 0)),
                pl.BlockSpec((Cout, 1), lambda n: (0, 0)),
            ],
            out_specs=pl.BlockSpec((None, Cout, P), lambda n: (n, 0, 0)),
            scratch_shapes=[
                pltpu.VMEM((Cin, 2 * M + P), jnp.float32),
                pltpu.VMEM((Cmid, 2 * M + P), jnp.float32),
                pltpu.VMEM((9 * Cin, P), jnp.float32),
                pltpu.VMEM((9 * Cmid, P), jnp.float32),
            ],
        ),
        compiler_params=pltpu.CompilerParams(
            dimension_semantics=("parallel",)),   # batch shards across TCs
    )(x2f, x1f, b_up, w1m, b1, w2m, b2)

    return out.reshape(N, Cout, H, W)             # free reshape back to NCHW


# ----------------------------------------------------------------------------
# Deterministic synthetic parameters (inference-mode BN folded to scale/bias)
# ----------------------------------------------------------------------------
def make_params(key, in_ch, out_ch):
    eps = 1e-5
    ks = jax.random.split(key, 12)

    def conv_bn(keys, cin, cout):
        kw, kb, kg, kbe, km, kv = keys
        w = jax.random.normal(kw, (3, 3, cin, cout), jnp.float32) * 0.1  # HWIO
        b = jax.random.normal(kb, (cout,), jnp.float32) * 0.1
        gamma = 1.0 + 0.1 * jax.random.normal(kg, (cout,), jnp.float32)
        beta = 0.1 * jax.random.normal(kbe, (cout,), jnp.float32)
        mean = 0.1 * jax.random.normal(km, (cout,), jnp.float32)
        var = 1.0 + 0.1 * jax.random.uniform(kv, (cout,), jnp.float32)
        g = gamma / jnp.sqrt(var + eps)
        sb = jnp.stack([g, (b - mean) * g + beta], axis=0)   # (2, cout)
        return w, sb

    w1_hwio, sb1 = conv_bn(ks[0:6], in_ch, out_ch)
    w2_hwio, sb2 = conv_bn(ks[6:12], out_ch, out_ch)
    return {"w1_hwio": w1_hwio, "sb1": sb1, "w2_hwio": w2_hwio, "sb2": sb2}


# ----------------------------------------------------------------------------
# Pure-JAX reference (gather-based upsample + lax.conv) for the self-check
# ----------------------------------------------------------------------------
def upsample2x_bilinear_align_corners(x):
    N, C, H, W = x.shape
    Ho, Wo = 2 * H, 2 * W

    def coords(n_in, n_out):
        if n_in == 1:
            z = jnp.zeros((n_out,), jnp.float32)
            zi = jnp.zeros((n_out,), jnp.int32)
            return z, zi, zi
        src = jnp.arange(n_out, dtype=jnp.float32) * (n_in - 1) / (n_out - 1)
        i0 = jnp.clip(jnp.floor(src).astype(jnp.int32), 0, n_in - 2)
        return src - i0.astype(jnp.float32), i0, i0 + 1

    fh, h0, h1 = coords(H, Ho)
    fw, w0, w1 = coords(W, Wo)
    xh = (x[:, :, h0, :] * (1.0 - fh)[None, None, :, None]
          + x[:, :, h1, :] * fh[None, None, :, None])
    return (xh[:, :, :, w0] * (1.0 - fw)[None, None, None, :]
            + xh[:, :, :, w1] * fw[None, None, None, :])


def double_conv_ref(x_nchw, params):
    def conv(x, w_hwio, sb):
        w_oihw = jnp.transpose(w_hwio, (3, 2, 0, 1))
        y = lax.conv_general_dilated(
            x, w_oihw, (1, 1), "SAME",
            dimension_numbers=("NCHW", "OIHW", "NCHW"))
        y = y * sb[0][None, :, None, None] + sb[1][None, :, None, None]
        return jnp.maximum(y, 0.0)

    y = conv(x_nchw, params["w1_hwio"], params["sb1"])
    return conv(y, params["w2_hwio"], params["sb2"])


def u_up_ref(x1, x2, params):
    x1u = upsample2x_bilinear_align_corners(x1)
    diffX = x2.shape[2] - x1u.shape[2]
    diffY = x2.shape[3] - x1u.shape[3]
    x1u = jnp.pad(x1u, ((0, 0), (0, 0), (diffX, 0), (diffY, 0)))
    x = jnp.concatenate([x2, x1u], axis=1)
    return double_conv_ref(x, params)


if __name__ == "__main__":
    in_ch, out_ch = 4, 4          # U_up(in_ch=4, out_ch=4, bilinear=True)
    N, H2, W2 = 2, 16, 16         # x2 spatial size
    key = jax.random.PRNGKey(0)
    k1, k2, kp = jax.random.split(key, 3)

    x1 = jax.random.normal(k1, (N, in_ch // 2, H2 // 2, W2 // 2), jnp.float32)
    x2 = jax.random.normal(k2, (N, in_ch // 2, H2, W2), jnp.float32)
    params = make_params(kp, in_ch, out_ch)

    ref = jax.block_until_ready(u_up_ref(x1, x2, params))

    # Exact-algorithm check: f32 MXU operands, tight tolerance.
    out_f32 = jax.block_until_ready(
        jax.jit(functools.partial(u_up_pallas, dot_dtype=jnp.float32))(
            x1, x2, params))
    np.testing.assert_allclose(np.asarray(out_f32), np.asarray(ref),
                               rtol=1e-3, atol=1e-3)

    # Performance configuration: bf16 MXU operands (f32 accumulation).
    # Tolerance reflects bf16 rounding of the dot operands only.
    out_bf16 = jax.block_until_ready(jax.jit(u_up_pallas)(x1, x2, params))
    np.testing.assert_allclose(np.asarray(out_bf16), np.asarray(ref),
                               rtol=5e-2, atol=5e-2)

    print("KERNEL_OK")
</pallas_src>

<mosaic_0001>
module attributes {stable_mosaic.version = 11 : i64} {
  func.func @_u_up_kernel(%arg0: i32, %arg1: memref<1x2x256xf32, #tpu.memory_space<vmem>>, %arg2: memref<1x2x64xf32, #tpu.memory_space<vmem>>, %arg3: memref<64x256xf32, #tpu.memory_space<vmem>>, %arg4: memref<4x36xf32, #tpu.memory_space<vmem>>, %arg5: memref<4x1xf32, #tpu.memory_space<vmem>>, %arg6: memref<4x36xf32, #tpu.memory_space<vmem>>, %arg7: memref<4x1xf32, #tpu.memory_space<vmem>>, %arg8: memref<1x4x256xf32, #tpu.memory_space<vmem>>, %arg9: memref<4x512xf32, #tpu.memory_space<vmem>>, %arg10: memref<4x512xf32, #tpu.memory_space<vmem>>, %arg11: memref<36x256xf32, #tpu.memory_space<vmem>>, %arg12: memref<36x256xf32, #tpu.memory_space<vmem>>) attributes {dimension_semantics = [#tpu.dimension_semantics<parallel>], iteration_bounds = array<i64: 2>, scalar_prefetch = 0 : i64, scratch_operands = 4 : i64, tpu.core_type = #tpu.core_type<tc>, window_params = [{transform_indices = @transform_0, window_bounds = array<i64: 1, 2, 256>}, {transform_indices = @transform_1, window_bounds = array<i64: 1, 2, 64>}, {pipeline_mode = #tpu.pipeline_mode<synchronous>, transform_indices = @transform_2, window_bounds = array<i64: 64, 256>}, {pipeline_mode = #tpu.pipeline_mode<synchronous>, transform_indices = @transform_3, window_bounds = array<i64: 4, 36>}, {pipeline_mode = #tpu.pipeline_mode<synchronous>, transform_indices = @transform_4, window_bounds = array<i64: 4, 1>}, {pipeline_mode = #tpu.pipeline_mode<synchronous>, transform_indices = @transform_5, window_bounds = array<i64: 4, 36>}, {pipeline_mode = #tpu.pipeline_mode<synchronous>, transform_indices = @transform_6, window_bounds = array<i64: 4, 1>}, {transform_indices = @transform_7, window_bounds = array<i64: 1, 4, 256>}]} {
    %c0 = arith.constant 0 : index
    %c0_0 = arith.constant 0 : index
    %c0_1 = arith.constant 0 : index
    %0 = vector.load %arg2[%c0, %c0_0, %c0_1] : memref<1x2x64xf32, #tpu.memory_space<vmem>>, vector<1x2x64xf32>
    %1 = vector.shape_cast %0 : vector<1x2x64xf32> to vector<2x64xf32>
    %c0_2 = arith.constant 0 : index
    %c0_3 = arith.constant 0 : index
    %2 = vector.load %arg3[%c0_2, %c0_3] : memref<64x256xf32, #tpu.memory_space<vmem>>, vector<64x256xf32>
    %cst = arith.constant dense<0.000000e+00> : vector<2x256xf32>
    %3 = tpu.matmul %1, %2, %cst {dimension_numbers = #tpu.dot_dimension_numbers<[1], [0], [0], [1], [0, 0, 1, 1], [], []>} : vector<2x64xf32>, vector<64x256xf32>, vector<2x256xf32> -> vector<2x256xf32>
    %cst_4 = arith.constant 0.000000e+00 : f32
    %4 = vector.broadcast %cst_4 : f32 to vector<4x128xf32>
    %c0_5 = arith.constant 0 : index
    %c0_6 = arith.constant 0 : index
    %5 = vector.load %arg9[%c0_5, %c0_6] : memref<4x512xf32, #tpu.memory_space<vmem>>, vector<4x128xf32>
    tpu.vector_store %arg9[%c0_5, %c0_6], %4 {strides = array<i32>} : memref<4x512xf32, #tpu.memory_space<vmem>>, vector<4x128xf32>,
    %cst_7 = arith.constant 0.000000e+00 : f32
    %6 = vector.broadcast %cst_7 : f32 to vector<4x128xf32>
    %c0_8 = arith.constant 0 : index
    %c384 = arith.constant 384 : index
    %7 = vector.load %arg9[%c0_8, %c384] : memref<4x512xf32, #tpu.memory_space<vmem>>, vector<4x128xf32>
    tpu.vector_store %arg9[%c0_8, %c384], %6 {strides = array<i32>} : memref<4x512xf32, #tpu.memory_space<vmem>>, vector<4x128xf32>,
    %c0_9 = arith.constant 0 : index
    %c0_10 = arith.constant 0 : index
    %c0_11 = arith.constant 0 : index
    %8 = vector.load %arg1[%c0_9, %c0_10, %c0_11] : memref<1x2x256xf32, #tpu.memory_space<vmem>>, vector<1x2x256xf32>
    %9 = vector.shape_cast %8 : vector<1x2x256xf32> to vector<2x256xf32>
    %c0_12 = arith.constant 0 : index
    %c128 = arith.constant 128 : index
    %10 = vector.load %arg9[%c0_12, %c128] : memref<4x512xf32, #tpu.memory_space<vmem>>, vector<2x256xf32>
    tpu.vector_store %arg9[%c0_12, %c128], %9 {strides = array<i32>} : memref<4x512xf32, #tpu.memory_space<vmem>>, vector<2x256xf32>,
    %c2 = arith.constant 2 : index
    %c128_13 = arith.constant 128 : index
    %11 = vector.load %arg9[%c2, %c128_13] : memref<4x512xf32, #tpu.memory_space<vmem>>, vector<2x256xf32>
    tpu.vector_store %arg9[%c2, %c128_13], %3 {strides = array<i32>} : memref<4x512xf32, #tpu.memory_space<vmem>>, vector<2x256xf32>,
    %cst_14 = arith.constant 0.000000e+00 : f32
    %12 = vector.broadcast %cst_14 : f32 to vector<4x128xf32>
    %c0_15 = arith.constant 0 : index
    %c0_16 = arith.constant 0 : index
    %13 = vector.load %arg10[%c0_15, %c0_16] : memref<4x512xf32, #tpu.memory_space<vmem>>, vector<4x128xf32>
    tpu.vector_store %arg10[%c0_15, %c0_16], %12 {strides = array<i32>} : memref<4x512xf32, #tpu.memory_space<vmem>>, vector<4x128xf32>,
    %cst_17 = arith.constant 0.000000e+00 : f32
    %14 = vector.broadcast %cst_17 : f32 to vector<4x128xf32>
    %c0_18 = arith.constant 0 : index
    %c384_19 = arith.constant 384 : index
    %15 = vector.load %arg10[%c0_18, %c384_19] : memref<4x512xf32, #tpu.memory_space<vmem>>, vector<4x128xf32>
    tpu.vector_store %arg10[%c0_18, %c384_19], %14 {strides = array<i32>} : memref<4x512xf32, #tpu.memory_space<vmem>>, vector<4x128xf32>,
    %16 = tpu.iota {dimensions = array<i32: 1>} : vector<1x256xi32>
    %c16_i32 = arith.constant 16 : i32
    %c0_i32 = arith.constant 0 : i32
    %17 = arith.cmpi eq, %c16_i32, %c0_i32 : i32
    %c1_i32 = arith.constant 1 : i32
    %18 = arith.select %17, %c1_i32, %c16_i32 : i32
    %19 = vector.broadcast %18 : i32 to vector<1x256xi32>
    %20 = arith.remsi %16, %19 : vector<1x256xi32>
    %c0_i32_20 = arith.constant 0 : i32
    %21 = vector.broadcast %c0_i32_20 : i32 to vector<1x256xi32>
    %22 = arith.cmpi ne, %20, %21 : vector<1x256xi32>
    %c0_i32_21 = arith.constant 0 : i32
    %23 = vector.broadcast %c0_i32_21 : i32 to vector<1x256xi32>
    %24 = arith.cmpi slt, %20, %23 : vector<1x256xi32>
    %c0_i32_22 = arith.constant 0 : i32
    %25 = arith.cmpi slt, %18, %c0_i32_22 : i32
    %26 = vector.broadcast %25 : i1 to vector<1x256xi1>
    %27 = vector.broadcast %26 : vector<1x256xi1> to vector<1x256xi1>
    %28 = arith.xori %24, %27 : vector<1x256xi1>
    %29 = arith.andi %28, %22 : vector<1x256xi1>
    %30 = vector.broadcast %18 : i32 to vector<1x256xi32>
    %31 = arith.addi %20, %30 : vector<1x256xi32>
    %32 = arith.select %29, %31, %20 : vector<1x256xi1>, vector<1x256xi32>
    %c1_i32_23 = arith.constant 1 : i32
    %33 = vector.broadcast %c1_i32_23 : i32 to vector<1x256xi32>
    %34 = arith.cmpi sge, %32, %33 : vector<1x256xi32>
    %c14_i32 = arith.constant 14 : i32
    %35 = vector.broadcast %c14_i32 : i32 to vector<1x256xi32>
    %36 = arith.cmpi sle, %32, %35 : vector<1x256xi32>
    %c0_24 = arith.constant 0 : index
    %c111 = arith.constant 111 : index
    %37 = vector.load %arg9[%c0_24, %c111] : memref<4x512xf32, #tpu.memory_space<vmem>>, vector<4x256xf32>
    %cst_25 = arith.constant 0.000000e+00 : f32
    %38 = vector.broadcast %cst_25 : f32 to vector<4x256xf32>
    %39 = vector.shape_cast %34 : vector<1x256xi1> to vector<1x256xi1>
    %40 = vector.broadcast %39 : vector<1x256xi1> to vector<4x256xi1>
    %41 = arith.select %40, %37, %38 : vector<4x256xi1>, vector<4x256xf32>
    %c0_26 = arith.constant 0 : index
    %c0_27 = arith.constant 0 : index
    %42 = vector.load %arg11[%c0_26, %c0_27] : memref<36x256xf32, #tpu.memory_space<vmem>>, vector<4x256xf32>
    tpu.vector_store %arg11[%c0_26, %c0_27], %41 {strides = array<i32>} : memref<36x256xf32, #tpu.memory_space<vmem>>, vector<4x256xf32>,
    %c0_28 = arith.constant 0 : index
    %c112 = arith.constant 112 : index
    %43 = vector.load %arg9[%c0_28, %c112] : memref<4x512xf32, #tpu.memory_space<vmem>>, vector<4x256xf32>
    %c4 = arith.constant 4 : index
    %c0_29 = arith.constant 0 : index
    %44 = vector.load %arg11[%c4, %c0_29] : memref<36x256xf32, #tpu.memory_space<vmem>>, vector<4x256xf32>
    tpu.vector_store %arg11[%c4, %c0_29], %43 {strides = array<i32>} : memref<36x256xf32, #tpu.memory_space<vmem>>, vector<4x256xf32>,
    %c0_30 = arith.constant 0 : index
    %c113 = arith.constant 113 : index
    %45 = vector.load %arg9[%c0_30, %c113] : memref<4x512xf32, #tpu.memory_space<vmem>>, vector<4x256xf32>
    %cst_31 = arith.constant 0.000000e+00 : f32
    %46 = vector.broadcast %cst_31 : f32 to vector<4x256xf32>
    %47 = vector.shape_cast %36 : vector<1x256xi1> to vector<1x256xi1>
    %48 = vector.broadcast %47 : vector<1x256xi1> to vector<4x256xi1>
    %49 = arith.select %48, %45, %46 : vector<4x256xi1>, vector<4x256xf32>
    %c8 = arith.constant 8 : index
    %c0_32 = arith.constant 0 : index
    %50 = vector.load %arg11[%c8, %c0_32] : memref<36x256xf32, #tpu.memory_space<vmem>>, vector<4x256xf32>
    tpu.vector_store %arg11[%c8, %c0_32], %49 {strides = array<i32>} : memref<36x256xf32, #tpu.memory_space<vmem>>, vector<4x256xf32>,
    %c0_33 = arith.constant 0 : index
    %c127 = arith.constant 127 : index
    %51 = vector.load %arg9[%c0_33, %c127] : memref<4x512xf32, #tpu.memory_space<vmem>>, vector<4x256xf32>
    %cst_34 = arith.constant 0.000000e+00 : f32
    %52 = vector.broadcast %cst_34 : f32 to vector<4x256xf32>
    %53 = vector.shape_cast %34 : vector<1x256xi1> to vector<1x256xi1>
    %54 = vector.broadcast %53 : vector<1x256xi1> to vector<4x256xi1>
    %55 = arith.select %54, %51, %52 : vector<4x256xi1>, vector<4x256xf32>
    %c12 = arith.constant 12 : index
    %c0_35 = arith.constant 0 : index
    %56 = vector.load %arg11[%c12, %c0_35] : memref<36x256xf32, #tpu.memory_space<vmem>>, vector<4x256xf32>
    tpu.vector_store %arg11[%c12, %c0_35], %55 {strides = array<i32>} : memref<36x256xf32, #tpu.memory_space<vmem>>, vector<4x256xf32>,
    %c0_36 = arith.constant 0 : index
    %c128_37 = arith.constant 128 : index
    %57 = vector.load %arg9[%c0_36, %c128_37] : memref<4x512xf32, #tpu.memory_space<vmem>>, vector<4x256xf32>
    %c16 = arith.constant 16 : index
    %c0_38 = arith.constant 0 : index
    %58 = vector.load %arg11[%c16, %c0_38] : memref<36x256xf32, #tpu.memory_space<vmem>>, vector<4x256xf32>
    tpu.vector_store %arg11[%c16, %c0_38], %57 {strides = array<i32>} : memref<36x256xf32, #tpu.memory_space<vmem>>, vector<4x256xf32>,
    %c0_39 = arith.constant 0 : index
    %c129 = arith.constant 129 : index
    %59 = vector.load %arg9[%c0_39, %c129] : memref<4x512xf32, #tpu.memory_space<vmem>>, vector<4x256xf32>
    %cst_40 = arith.constant 0.000000e+00 : f32
    %60 = vector.broadcast %cst_40 : f32 to vector<4x256xf32>
    %61 = vector.shape_cast %36 : vector<1x256xi1> to vector<1x256xi1>
    %62 = vector.broadcast %61 : vector<1x256xi1> to vector<4x256xi1>
    %63 = arith.select %62, %59, %60 : vector<4x256xi1>, vector<4x256xf32>
    %c20 = arith.constant 20 : index
    %c0_41 = arith.constant 0 : index
    %64 = vector.load %arg11[%c20, %c0_41] : memref<36x256xf32, #tpu.memory_space<vmem>>, vector<4x256xf32>
    tpu.vector_store %arg11[%c20, %c0_41], %63 {strides = array<i32>} : memref<36x256xf32, #tpu.memory_space<vmem>>, vector<4x256xf32>,
    %c0_42 = arith.constant 0 : index
    %c143 = arith.constant 143 : index
    %65 = vector.load %arg9[%c0_42, %c143] : memref<4x512xf32, #tpu.memory_space<vmem>>, vector<4x256xf32>
    %cst_43 = arith.constant 0.000000e+00 : f32
    %66 = vector.broadcast %cst_43 : f32 to vector<4x256xf32>
    %67 = vector.shape_cast %34 : vector<1x256xi1> to vector<1x256xi1>
    %68 = vector.broadcast %67 : vector<1x256xi1> to vector<4x256xi1>
    %69 = arith.select %68, %65, %66 : vector<4x256xi1>, vector<4x256xf32>
    %c24 = arith.constant 24 : index
    %c0_44 = arith.constant 0 : index
    %70 = vector.load %arg11[%c24, %c0_44] : memref<36x256xf32, #tpu.memory_space<vmem>>, vector<4x256xf32>
    tpu.vector_store %arg11[%c24, %c0_44], %69 {strides = array<i32>} : memref<36x256xf32, #tpu.memory_space<vmem>>, vector<4x256xf32>,
    %c0_45 = arith.constant 0 : index
    %c144 = arith.constant 144 : index
    %71 = vector.load %arg9[%c0_45, %c144] : memref<4x512xf32, #tpu.memory_space<vmem>>, vector<4x256xf32>
    %c28 = arith.constant 28 : index
    %c0_46 = arith.constant 0 : index
    %72 = vector.load %arg11[%c28, %c0_46] : memref<36x256xf32, #tpu.memory_space<vmem>>, vector<4x256xf32>
    tpu.vector_store %arg11[%c28, %c0_46], %71 {strides = array<i32>} : memref<36x256xf32, #tpu.memory_space<vmem>>, vector<4x256xf32>,
    %c0_47 = arith.constant 0 : index
    %c145 = arith.constant 145 : index
    %73 = vector.load %arg9[%c0_47, %c145] : memref<4x512xf32, #tpu.memory_space<vmem>>, vector<4x256xf32>
    %cst_48 = arith.constant 0.000000e+00 : f32
    %74 = vector.broadcast %cst_48 : f32 to vector<4x256xf32>
    %75 = vector.shape_cast %36 : vector<1x256xi1> to vector<1x256xi1>
    %76 = vector.broadcast %75 : vector<1x256xi1> to vector<4x256xi1>
    %77 = arith.select %76, %73, %74 : vector<4x256xi1>, vector<4x256xf32>
    %c32 = arith.constant 32 : index
    %c0_49 = arith.constant 0 : index
    %78 = vector.load %arg11[%c32, %c0_49] : memref<36x256xf32, #tpu.memory_space<vmem>>, vector<4x256xf32>
    tpu.vector_store %arg11[%c32, %c0_49], %77 {strides = array<i32>} : memref<36x256xf32, #tpu.memory_space<vmem>>, vector<4x256xf32>,
    %c0_50 = arith.constant 0 : index
    %c0_51 = arith.constant 0 : index
    %79 = vector.load %arg4[%c0_50, %c0_51] : memref<4x36xf32, #tpu.memory_space<vmem>>, vector<4x36xf32>
    %c0_52 = arith.constant 0 : index
    %c0_53 = arith.constant 0 : index
    %80 = vector.load %arg11[%c0_52, %c0_53] : memref<36x256xf32, #tpu.memory_space<vmem>>, vector<36x256xf32>
    %cst_54 = arith.constant dense<0.000000e+00> : vector<4x256xf32>
    %81 = tpu.matmul %79, %80, %cst_54 {dimension_numbers = #tpu.dot_dimension_numbers<[1], [0], [0], [1], [0, 0, 1, 1], [], []>} : vector<4x36xf32>, vector<36x256xf32>, vector<4x256xf32> -> vector<4x256xf32>
    %c0_55 = arith.constant 0 : index
    %c0_56 = arith.constant 0 : index
    %82 = vector.load %arg5[%c0_55, %c0_56] : memref<4x1xf32, #tpu.memory_space<vmem>>, vector<4x1xf32>
    %83 = vector.broadcast %82 : vector<4x1xf32> to vector<4x256xf32>
    %84 = arith.addf %81, %83 : vector<4x256xf32>
    %cst_57 = arith.constant 0.000000e+00 : f32
    %85 = vector.broadcast %cst_57 : f32 to vector<4x256xf32>
    %86 = arith.maximumf %84, %85 : vector<4x256xf32>
    %c0_58 = arith.constant 0 : index
    %c128_59 = arith.constant 128 : index
    %87 = vector.load %arg10[%c0_58, %c128_59] : memref<4x512xf32, #tpu.memory_space<vmem>>, vector<4x256xf32>
    tpu.vector_store %arg10[%c0_58, %c128_59], %86 {strides = array<i32>} : memref<4x512xf32, #tpu.memory_space<vmem>>, vector<4x256xf32>,
    %c0_60 = arith.constant 0 : index
    %c111_61 = arith.constant 111 : index
    %88 = vector.load %arg10[%c0_60, %c111_61] : memref<4x512xf32, #tpu.memory_space<vmem>>, vector<4x256xf32>
    %cst_62 = arith.constant 0.000000e+00 : f32
    %89 = vector.broadcast %cst_62 : f32 to vector<4x256xf32>
    %90 = vector.shape_cast %34 : vector<1x256xi1> to vector<1x256xi1>
    %91 = vector.broadcast %90 : vector<1x256xi1> to vector<4x256xi1>
    %92 = arith.select %91, %88, %89 : vector<4x256xi1>, vector<4x256xf32>
    %c0_63 = arith.constant 0 : index
    %c0_64 = arith.constant 0 : index
    %93 = vector.load %arg12[%c0_63, %c0_64] : memref<36x256xf32, #tpu.memory_space<vmem>>, vector<4x256xf32>
    tpu.vector_store %arg12[%c0_63, %c0_64], %92 {strides = array<i32>} : memref<36x256xf32, #tpu.memory_space<vmem>>, vector<4x256xf32>,
    %c0_65 = arith.constant 0 : index
    %c112_66 = arith.constant 112 : index
    %94 = vector.load %arg10[%c0_65, %c112_66] : memref<4x512xf32, #tpu.memory_space<vmem>>, vector<4x256xf32>
    %c4_67 = arith.constant 4 : index
    %c0_68 = arith.constant 0 : index
    %95 = vector.load %arg12[%c4_67, %c0_68] : memref<36x256xf32, #tpu.memory_space<vmem>>, vector<4x256xf32>
    tpu.vector_store %arg12[%c4_67, %c0_68], %94 {strides = array<i32>} : memref<36x256xf32, #tpu.memory_space<vmem>>, vector<4x256xf32>,
    %c0_69 = arith.constant 0 : index
    %c113_70 = arith.constant 113 : index
    %96 = vector.load %arg10[%c0_69, %c113_70] : memref<4x512xf32, #tpu.memory_space<vmem>>, vector<4x256xf32>
    %cst_71 = arith.constant 0.000000e+00 : f32
    %97 = vector.broadcast %cst_71 : f32 to vector<4x256xf32>
    %98 = vector.shape_cast %36 : vector<1x256xi1> to vector<1x256xi1>
    %99 = vector.broadcast %98 : vector<1x256xi1> to vector<4x256xi1>
    %100 = arith.select %99, %96, %97 : vector<4x256xi1>, vector<4x256xf32>
    %c8_72 = arith.constant 8 : index
    %c0_73 = arith.constant 0 : index
    %101 = vector.load %arg12[%c8_72, %c0_73] : memref<36x256xf32, #tpu.memory_space<vmem>>, vector<4x256xf32>
    tpu.vector_store %arg12[%c8_72, %c0_73], %100 {strides = array<i32>} : memref<36x256xf32, #tpu.memory_space<vmem>>, vector<4x256xf32>,
    %c0_74 = arith.constant 0 : index
    %c127_75 = arith.constant 127 : index
    %102 = vector.load %arg10[%c0_74, %c127_75] : memref<4x512xf32, #tpu.memory_space<vmem>>, vector<4x256xf32>
    %cst_76 = arith.constant 0.000000e+00 : f32
    %103 = vector.broadcast %cst_76 : f32 to vector<4x256xf32>
    %104 = vector.shape_cast %34 : vector<1x256xi1> to vector<1x256xi1>
    %105 = vector.broadcast %104 : vector<1x256xi1> to vector<4x256xi1>
    %106 = arith.select %105, %102, %103 : vector<4x256xi1>, vector<4x256xf32>
    %c12_77 = arith.constant 12 : index
    %c0_78 = arith.constant 0 : index
    %107 = vector.load %arg12[%c12_77, %c0_78] : memref<36x256xf32, #tpu.memory_space<vmem>>, vector<4x256xf32>
    tpu.vector_store %arg12[%c12_77, %c0_78], %106 {strides = array<i32>} : memref<36x256xf32, #tpu.memory_space<vmem>>, vector<4x256xf32>,
    %c0_79 = arith.constant 0 : index
    %c128_80 = arith.constant 128 : index
    %108 = vector.load %arg10[%c0_79, %c128_80] : memref<4x512xf32, #tpu.memory_space<vmem>>, vector<4x256xf32>
    %c16_81 = arith.constant 16 : index
    %c0_82 = arith.constant 0 : index
    %109 = vector.load %arg12[%c16_81, %c0_82] : memref<36x256xf32, #tpu.memory_space<vmem>>, vector<4x256xf32>
    tpu.vector_store %arg12[%c16_81, %c0_82], %108 {strides = array<i32>} : memref<36x256xf32, #tpu.memory_space<vmem>>, vector<4x256xf32>,
    %c0_83 = arith.constant 0 : index
    %c129_84 = arith.constant 129 : index
    %110 = vector.load %arg10[%c0_83, %c129_84] : memref<4x512xf32, #tpu.memory_space<vmem>>, vector<4x256xf32>
    %cst_85 = arith.constant 0.000000e+00 : f32
    %111 = vector.broadcast %cst_85 : f32 to vector<4x256xf32>
    %112 = vector.shape_cast %36 : vector<1x256xi1> to vector<1x256xi1>
    %113 = vector.broadcast %112 : vector<1x256xi1> to vector<4x256xi1>
    %114 = arith.select %113, %110, %111 : vector<4x256xi1>, vector<4x256xf32>
    %c20_86 = arith.constant 20 : index
    %c0_87 = arith.constant 0 : index
    %115 = vector.load %arg12[%c20_86, %c0_87] : memref<36x256xf32, #tpu.memory_space<vmem>>, vector<4x256xf32>
    tpu.vector_store %arg12[%c20_86, %c0_87], %114 {strides = array<i32>} : memref<36x256xf32, #tpu.memory_space<vmem>>, vector<4x256xf32>,
    %c0_88 = arith.constant 0 : index
    %c143_89 = arith.constant 143 : index
    %116 = vector.load %arg10[%c0_88, %c143_89] : memref<4x512xf32, #tpu.memory_space<vmem>>, vector<4x256xf32>
    %cst_90 = arith.constant 0.000000e+00 : f32
    %117 = vector.broadcast %cst_90 : f32 to vector<4x256xf32>
    %118 = vector.shape_cast %34 : vector<1x256xi1> to vector<1x256xi1>
    %119 = vector.broadcast %118 : vector<1x256xi1> to vector<4x256xi1>
    %120 = arith.select %119, %116, %117 : vector<4x256xi1>, vector<4x256xf32>
    %c24_91 = arith.constant 24 : index
    %c0_92 = arith.constant 0 : index
    %121 = vector.load %arg12[%c24_91, %c0_92] : memref<36x256xf32, #tpu.memory_space<vmem>>, vector<4x256xf32>
    tpu.vector_store %arg12[%c24_91, %c0_92], %120 {strides = array<i32>} : memref<36x256xf32, #tpu.memory_space<vmem>>, vector<4x256xf32>,
    %c0_93 = arith.constant 0 : index
    %c144_94 = arith.constant 144 : index
    %122 = vector.load %arg10[%c0_93, %c144_94] : memref<4x512xf32, #tpu.memory_space<vmem>>, vector<4x256xf32>
    %c28_95 = arith.constant 28 : index
    %c0_96 = arith.constant 0 : index
    %123 = vector.load %arg12[%c28_95, %c0_96] : memref<36x256xf32, #tpu.memory_space<vmem>>, vector<4x256xf32>
    tpu.vector_store %arg12[%c28_95, %c0_96], %122 {strides = array<i32>} : memref<36x256xf32, #tpu.memory_space<vmem>>, vector<4x256xf32>,
    %c0_97 = arith.constant 0 : index
    %c145_98 = arith.constant 145 : index
    %124 = vector.load %arg10[%c0_97, %c145_98] : memref<4x512xf32, #tpu.memory_space<vmem>>, vector<4x256xf32>
    %cst_99 = arith.constant 0.000000e+00 : f32
    %125 = vector.broadcast %cst_99 : f32 to vector<4x256xf32>
    %126 = vector.shape_cast %36 : vector<1x256xi1> to vector<1x256xi1>
    %127 = vector.broadcast %126 : vector<1x256xi1> to vector<4x256xi1>
    %128 = arith.select %127, %124, %125 : vector<4x256xi1>, vector<4x256xf32>
    %c32_100 = arith.constant 32 : index
    %c0_101 = arith.constant 0 : index
    %129 = vector.load %arg12[%c32_100, %c0_101] : memref<36x256xf32, #tpu.memory_space<vmem>>, vector<4x256xf32>
    tpu.vector_store %arg12[%c32_100, %c0_101], %128 {strides = array<i32>} : memref<36x256xf32, #tpu.memory_space<vmem>>, vector<4x256xf32>,
    %c0_102 = arith.constant 0 : index
    %c0_103 = arith.constant 0 : index
    %130 = vector.load %arg6[%c0_102, %c0_103] : memref<4x36xf32, #tpu.memory_space<vmem>>, vector<4x36xf32>
    %c0_104 = arith.constant 0 : index
    %c0_105 = arith.constant 0 : index
    %131 = vector.load %arg12[%c0_104, %c0_105] : memref<36x256xf32, #tpu.memory_space<vmem>>, vector<36x256xf32>
    %cst_106 = arith.constant dense<0.000000e+00> : vector<4x256xf32>
    %132 = tpu.matmul %130, %131, %cst_106 {dimension_numbers = #tpu.dot_dimension_numbers<[1], [0], [0], [1], [0, 0, 1, 1], [], []>} : vector<4x36xf32>, vector<36x256xf32>, vector<4x256xf32> -> vector<4x256xf32>
    %c0_107 = arith.constant 0 : index
    %c0_108 = arith.constant 0 : index
    %133 = vector.load %arg7[%c0_107, %c0_108] : memref<4x1xf32, #tpu.memory_space<vmem>>, vector<4x1xf32>
    %134 = vector.broadcast %133 : vector<4x1xf32> to vector<4x256xf32>
    %135 = arith.addf %132, %134 : vector<4x256xf32>
    %cst_109 = arith.constant 0.000000e+00 : f32
    %136 = vector.broadcast %cst_109 : f32 to vector<4x256xf32>
    %137 = arith.maximumf %135, %136 : vector<4x256xf32>
    %c0_110 = arith.constant 0 : index
    %c0_111 = arith.constant 0 : index
    %c0_112 = arith.constant 0 : index
    %138 = vector.load %arg8[%c0_110, %c0_111, %c0_112] : memref<1x4x256xf32, #tpu.memory_space<vmem>>, vector<1x4x256xf32>
    %139 = vector.shape_cast %138 : vector<1x4x256xf32> to vector<4x256xf32>
    %140 = vector.shape_cast %137 : vector<4x256xf32> to vector<1x4x256xf32>
    tpu.vector_store %arg8[%c0_110, %c0_111, %c0_112], %140 {strides = array<i32>} : memref<1x4x256xf32, #tpu.memory_space<vmem>>, vector<1x4x256xf32>,
    return
  }
  func.func @transform_0(%arg0: i32) -> (i32, i32, i32) {
    %c0_i32 = arith.constant 0 : i32
    %c0_i32_0 = arith.constant 0 : i32
    %c0_i32_1 = arith.constant 0 : i32
    return %arg0, %c0_i32, %c0_i32_0 : i32, i32, i32
  }
  func.func @transform_1(%arg0: i32) -> (i32, i32, i32) {
    %c0_i32 = arith.constant 0 : i32
    %c0_i32_0 = arith.constant 0 : i32
    %c0_i32_1 = arith.constant 0 : i32
    return %arg0, %c0_i32, %c0_i32_0 : i32, i32, i32
  }
  func.func @transform_2(%arg0: i32) -> (i32, i32) {
    %c0_i32 = arith.constant 0 : i32
    %c0_i32_0 = arith.constant 0 : i32
    %c0_i32_1 = arith.constant 0 : i32
    return %c0_i32, %c0_i32_0 : i32, i32
  }
  func.func @transform_3(%arg0: i32) -> (i32, i32) {
    %c0_i32 = arith.constant 0 : i32
    %c0_i32_0 = arith.constant 0 : i32
    %c0_i32_1 = arith.constant 0 : i32
    return %c0_i32, %c0_i32_0 : i32, i32
  }
  func.func @transform_4(%arg0: i32) -> (i32, i32) {
    %c0_i32 = arith.constant 0 : i32
    %c0_i32_0 = arith.constant 0 : i32
    %c0_i32_1 = arith.constant 0 : i32
    return %c0_i32, %c0_i32_0 : i32, i32
  }
  func.func @transform_5(%arg0: i32) -> (i32, i32) {
    %c0_i32 = arith.constant 0 : i32
    %c0_i32_0 = arith.constant 0 : i32
    %c0_i32_1 = arith.constant 0 : i32
    return %c0_i32, %c0_i32_0 : i32, i32
  }
  func.func @transform_6(%arg0: i32) -> (i32, i32) {
    %c0_i32 = arith.constant 0 : i32
    %c0_i32_0 = arith.constant 0 : i32
    %c0_i32_1 = arith.constant 0 : i32
    return %c0_i32, %c0_i32_0 : i32, i32
  }
  func.func @transform_7(%arg0: i32) -> (i32, i32, i32) {
    %c0_i32 = arith.constant 0 : i32
    %c0_i32_0 = arith.constant 0 : i32
    %c0_i32_1 = arith.constant 0 : i32
    return %arg0, %c0_i32, %c0_i32_0 : i32, i32, i32
  }
}

</mosaic_0001>

<bundles_post_ra>
// kernel: u_up_pallas.1
= control target key start
LH: loop header
LB: loop body
LE: loop exit
PB: predicated region body
PF: predicated region fallthrough
CT: control target
= control target key end

     0   :  { %s1162_s24 = smov 0   ;;  %s1433_s0 = inlined_call_operand.vmem [shape: f32[2,2,256], index: 0, kind: input, shape index: {}]   ;;  %s1434_s1 = inlined_call_operand.vmem [shape: f32[2,2,64], index: 1, kind: input, shape index: {}]   ;;  %s1435_s2 = inlined_call_operand.vmem [shape: f32[64,256], index: 2, kind: input, shape index: {}]   ;;  %s1436_s3 = inlined_call_operand.vmem [shape: f32[4,36], index: 3, kind: input, shape index: {}]   ;;  %s1437_s4 = inlined_call_operand.vmem [shape: f32[4,1], index: 4, kind: input, shape index: {}]   ;;  %s1438_s5 = inlined_call_operand.vmem [shape: f32[4,36], index: 5, kind: input, shape index: {}]   ;;  %s1439_s6 = inlined_call_operand.vmem [shape: f32[4,1], index: 6, kind: input, shape index: {}]   ;;  %s1440_s7 = inlined_call_operand.vmem [shape: f32[2,4,256], index: 7, kind: output, shape index: {}]  }
   0x1 LB: > { %s1060_s25 = sadd.s32 4294967295, %s1110_s24   ;;  %p1064_p0 = scmp.ge.s32.totalorder %s1110_s24, 1  ;;  %s1110_s24 = sphi %s1162_s24, %s17_s24  }
   0x2   : > { %p246_p1 = scmp.lt.s32.totalorder %s1110_s24, 3 }
   0x4   : > { %p247_p2 = pnand %p1064_p0, %p246_p1 }
   0x5   : > { %p282_p3 = scmp.lt.s32.totalorder (!%p247_p2), %s1060_s25, 1  ;;  %s1114_s23 = smov (!%p247_p2), 16  }
   0x6   : > { %250 = sbr.rel (%p247_p2) target bundleno = 886 (0x376), region = 48  ;;  %s1115_s26 = smov (!%p247_p2), 15  }
   0x7   : > { %s1116_s27 = smov (!%p247_p2), 1   ;;  %s1117_s28 = smov (!%p247_p2), 113  }
   0x8   : > { %s1119_s30 = smov (!%p247_p2), 111   ;;  %s1120_s8 = smov (!%p247_p2), 112  }
   0xb   : > { %v312_v0 = vld [vmem:[%s1435_s2 + $0x78] sm:$0xff]  ;;  %v311_v1 = vld [vmem:[%s1435_s2 + $0x70] sm:$0xff]  ;;  %v310_v2 = vld [vmem:[%s1435_s2 + $0x68] sm:$0xff]  ;;  %s1450_s25 = smov (!%p282_p3, %s1060_s25), 1  ;;  %vm313_vm0 = vcmask 523264   ;;  %v1112_v19 = vmov 0.0   ;;  %v375_v61 = vlaneseq }
   0xc   : > { %345 = vmatpush.msra.mxu1 %v312_v0  ;;  %325 = vmatpush.msra.mxu0 %v311_v1  ;;  %v309_v3 = vld [vmem:[%s1435_s2 + $0x60] sm:$0xff]  ;;  %v308_v4 = vld [vmem:[%s1435_s2 + $0x58] sm:$0xff]  ;;  %v307_v5 = vld [vmem:[%s1435_s2 + $0x50] sm:$0xff]  ;;  %s1082_s19 = sshll.u32 %s1450_s25, 2  ;;  %s1067_s29 = sshll.u32 %s1450_s25, 1  ;;  %vm368_vm1 = vcmask 1043456  }
   0xd   : > { %v306_v6 = vld [vmem:[%s1435_s2 + $0x48] sm:$0xff]  ;;  %v305_v7 = vld [vmem:[%s1435_s2 + $0x40] sm:$0xff]  ;;  %s286_s22 = scalar_lea.vmem %s1433_s0, %s1082_s19  ;;  %v304_v8 = vld [vmem:[%s1435_s2 + $0x38] sm:$0xff]  ;;  %s290_s17 = scalar_lea.vmem %s1434_s1, %s1067_s29  ;;  %357 = vst [vmem:[#allocation2] sm:$0xf] %v1112_v19  ;;  %v376_v62 = vand.u32 127, %v375_v61 }
   0xe   : > { %346 = vmatpush.msra.mxu1 %v310_v2  ;;  %326 = vmatpush.msra.mxu0 %v309_v3  ;;  %v303_v9 = vld [vmem:[%s1435_s2 + $0x30] sm:$0xff]  ;;  %v359_v10 = vld [vmem:[%s286_s22] sm:$0xf]  ;;  %v302_v11 = vld [vmem:[%s1435_s2 + $0x28] sm:$0xff]  ;;  %358 = vst [vmem:[#allocation2 + $0xc] sm:$0xf] %v1112_v19 }
   0xf   : > { %361 = vst [vmem:[#allocation1] ss:$2 sm:$0xff] %v359_v10  ;;  %v301_v12 = vld [vmem:[%s1435_s2 + $0x20] sm:$0xff]  ;;  %v300_v13 = vld [vmem:[%s1435_s2 + $0x18] sm:$0xff]  ;;  %v299_v14 = vld [vmem:[%s1435_s2 + $0x10] sm:$0xff]  ;;  %s1113_s22 = smov 17  }
  0x10   : > { %347 = vmatpush.msra.mxu1 %v308_v4  ;;  %327 = vmatpush.msra.mxu0 %v307_v5  ;;  %v298_v15 = vld [vmem:[%s1435_s2 + $0x8] sm:$0xff]  ;;  %v297_v16 = vld [vmem:[%s1435_s2] sm:$0xff]  ;;  %374 = vst [vmem:[#allocation3 + $0xc] sm:$0xf] %v1112_v19  ;;  %s1118_s29 = smov 127   ;;  %v377_v0 = vadd.s32 128, %v376_v62 }
  0x11   : > { %v296_v17 = vld [vmem:[%s290_s17] sm:$0x3]  ;;  %373 = vst [vmem:[#allocation3] sm:$0xf] %v1112_v19  ;;  %vm426_vm2 = vcmask 138240   ;;  %vm479_vm4 = vcmask 121856  }
  0x12   : > { %348 = vmatpush.msra.mxu1 %v306_v6  ;;  %328 = vmatpush.msra.mxu0 %v305_v7  ;;  %v389_v1 = vand.u32 15, %v377_v0  ;;  %vm504_vm7 = vcmask 7168   ;;  %vm575_vm9 = vcmask 924672   ;;  %vm544_vm10 = vcmask 1039360   ;;  %v930_v3 = vld [vmem:[%s1439_s6] sm:$0xf] }
  0x13   : > { %vm452_vm11 = vcmask 130048   ;;  %vm601_vm12 = vcmask 916480   ;;  %vm624_vm13 = vcmask 908288   ;;  %vm650_vm14 = vcmask 293888   ;;  %s1083_s17 = sshll.u32 %s1450_s25, 3 }
  0x14   : > { %349 = vmatpush.msra.mxu1 %v304_v8  ;;  %329 = vmatpush.msra.mxu0 %v303_v9  ;;  %vm1266_vm3 = vcmp.ge.s32.totalorder %v389_v1, 1  ;;  %v382_v8 = vand.u32 15, %v376_v62  ;;  %vm1278_vm6 = vcmp.le.s32.totalorder %v389_v1, 14  ;;  %s295_s20 = scalar_lea.vmem %s1440_s7, %s1083_s17 }
  0x15   : > { %v529_v40 = vld [vmem:[#allocation2 + $0xc] sm:$0xf] }
  0x16   : > { %350 = vmatpush.msra.mxu1 %v302_v11  ;;  %330 = vmatpush.msra.mxu0 %v301_v12  ;;  %v362_v18 = vld.sshfl [vmem:[#allocation1] sm:$0xff pattern:$0x75643120]  ;;  %v560_v44 = vld [vmem:[#allocation2 + $0xc] sm:$0xf]  ;;  %vm1274_vm5 = vcmp.le.s32.totalorder %v382_v8, 14 }
  0x17   : > { %364 = vst [vmem:[#allocation2 + $0x4] sm:$0x33] %v362_v18  ;;  %v585_v48 = vld [vmem:[#allocation2 + $0xc] sm:$0xf]  ;;  %vm1291_vm8 = vcmp.ge.s32.totalorder %v382_v8, 1 }
  0x18   : > { %351 = vmatpush.msra.mxu1 %v300_v13  ;;  %331 = vmatpush.msra.mxu0 %v299_v14  ;;  %v609_v52 = vld [vmem:[#allocation2 + $0xc] sm:$0xf] }
  0x1a   : > { %352 = vmatpush.msra.mxu1 %v298_v15  ;;  %332 = vmatpush.msra.mxu0 %v297_v16 }
  0x1b   : > { %1071 = vmatmul.msk.f32.vlgmr.msra.gmra.mxu1 %vm313_vm0, %v296_v17  ;;  %1070 = vmatmul.msk.f32.vlgmr.msra.gmra.mxu0 %vm313_vm0, %v296_v17 }
  0x98   : > { %v354_v20 = vpop.f32.mrf.mxu1  ;;  %v334_v21 = vpop.f32.mrf.mxu0 }
  0x99   : > { %v367_v22 = vrot.slane %v354_v20, 4 }
  0x9b   : > { %v369_v23 = vsel %vm368_vm1, %v334_v21, %v367_v22 }
  0x9c   : > { %v370_v24 = vrot.slane %v369_v23, 6 }
  0x9e   : > { %372 = vst [vmem:[#allocation2 + $0x4] sm:$0xcc] %v370_v24 }
  0xa5   : > { %v406_v25 = vld [vmem:[#allocation2] sm:$0xff]  ;;  %v407_v26 = vld [vmem:[#allocation2 + $0x8] sm:$0xf] }
  0xa6   : > { %414 = vst [vmem:[#allocation1] ss:$2 sm:$0xff] %v406_v25  ;;  %v436_v27 = vld [vmem:[#allocation2 + $0x8] sm:$0xf] }
  0xa7   : > { %416 = vst [vmem:[#allocation1 + $0x10] ss:$2 sm:$0xff] %v407_v26  ;;  %v460_v31 = vld [vmem:[#allocation2 + $0x8] sm:$0xf] }
  0xa8   : > { %v489_v35 = vld [vmem:[#allocation2 + $0x8] sm:$0xf] }
  0xa9   : > { %v519_v39 = vld [vmem:[#allocation2 + $0x4] sm:$0xff] }
  0xad   : > { %v1229_v28 = vld.sshfl [vmem:[#allocation1] sm:$0xff pattern:$0x75316420]  ;;  %v418_v29 = vld.sshfl [vmem:[#allocation1 + $0x8] sm:$0xff pattern:$0x75316420] }
  0xae   : > { %v419_v30 = vld.sshfl [vmem:[#allocation1 + $0x10] sm:$0xff pattern:$0x75316420]  ;;  %440 = vst [vmem:[#allocation1 + $0x1] ss:$2 sm:$0xff] %v406_v25  ;;  %422 = vrot.lane.b32.xlu2 %v418_v29, %s1113_s22 }
  0xaf   : > { %442 = vst [vmem:[#allocation1 + $0x11] ss:$2 sm:$0xff] %v436_v27  ;;  %424 = vrot.lane.b32.xlu0 %v419_v30, %s1113_s22 }
  0xb5   : > { %v1233_v32 = vld.sshfl [vmem:[#allocation1] sm:$0xff pattern:$0x75316420]  ;;  %v444_v33 = vld.sshfl [vmem:[#allocation1 + $0x8] sm:$0xff pattern:$0x75316420] }
  0xb6   : > { %v1235_v34 = vld.sshfl [vmem:[#allocation1 + $0x10] sm:$0xff pattern:$0x75316420]  ;;  %467 = vst [vmem:[#allocation1] ss:$2 sm:$0xff] %v406_v25  ;;  %448 = vrot.lane.b32.xlu2 %v444_v33, %s1114_s23 }
  0xb7   : > { %469 = vst [vmem:[#allocation1 + $0x10] ss:$2 sm:$0xff] %v460_v31 }
  0xbd   : > { %v470_v36 = vld.sshfl [vmem:[#allocation1] sm:$0xff pattern:$0x75316420]  ;;  %v471_v37 = vld.sshfl [vmem:[#allocation1 + $0x8] sm:$0xff pattern:$0x75316420] }
  0xbe   : > { %v472_v38 = vld.sshfl [vmem:[#allocation1 + $0x10] sm:$0xff pattern:$0x75316420]  ;;  %492 = vst [vmem:[#allocation1] ss:$2 sm:$0xff] %v406_v25  ;;  %475 = vrot.lane.b32.xlu2 %v471_v37, %s1115_s26  ;;  %473 = vrot.lane.b32.xlu1 %v470_v36, %s1115_s26 }
  0xbf   : > { %494 = vst [vmem:[#allocation1 + $0x10] ss:$2 sm:$0xff] %v489_v35  ;;  %477 = vrot.lane.b32.xlu0 %v472_v38, %s1115_s26 }
  0xc5   : > { %v496_v41 = vld.sshfl [vmem:[#allocation1 + $0x8] sm:$0xff pattern:$0x75316420]  ;;  %v495_v42 = vld.sshfl [vmem:[#allocation1] sm:$0xff pattern:$0x75316420] }
  0xc6   : > { %v497_v43 = vld.sshfl [vmem:[#allocation1 + $0x10] sm:$0xff pattern:$0x75316420]  ;;  %521 = vst [vmem:[#allocation1] ss:$2 sm:$0xff] %v519_v39 }
  0xc7   : > { %502 = vrot.lane.b32.xlu1 %v497_v43, %s1116_s27  ;;  %500 = vrot.lane.b32.xlu0 %v496_v41, %s1116_s27  ;;  %534 = vst [vmem:[#allocation1 + $0x10] ss:$2 sm:$0xff] %v529_v40 }
  0xcd   : > { %v522_v45 = vld.sshfl [vmem:[#allocation1] sm:$0xff pattern:$0x75316420]  ;;  %v523_v46 = vld.sshfl [vmem:[#allocation1 + $0x8] sm:$0xff pattern:$0x75316420] }
  0xce   : > { %v537_v47 = vld.sshfl [vmem:[#allocation1 + $0x10] sm:$0xff pattern:$0x75316420]  ;;  %532 = vst [vmem:[#allocation1] ss:$2 sm:$0xff] %v519_v39 }
  0xcf   : > { %498 = vrot.lane.b32.xlu1 %v495_v42, %s1116_s27  ;;  %565 = vst [vmem:[#allocation1 + $0x10] ss:$2 sm:$0xff] %v560_v44 }
  0xd0   : > { %526 = vst [vmem:[#allocation4 + $0x48] sm:$0xf] %v522_v45 }
  0xd1   : > { %527 = vst [vmem:[#allocation4 + $0x28] sm:$0xf] %v523_v46 }
  0xd5   : > { %v536_v49 = vld.sshfl [vmem:[#allocation1 + $0x8] sm:$0xff pattern:$0x75316420]  ;;  %v535_v50 = vld.sshfl [vmem:[#allocation1] sm:$0xff pattern:$0x75316420] }
  0xd6   : > { %v568_v51 = vld.sshfl [vmem:[#allocation1 + $0x10] sm:$0xff pattern:$0x75316420]  ;;  %563 = vst [vmem:[#allocation1] ss:$2 sm:$0xff] %v519_v39 }
  0xd7   : > { %573 = vrot.lane.b32.xlu2 %v568_v51, %s1117_s28  ;;  %542 = vrot.lane.b32.xlu1 %v537_v47, %s1118_s29  ;;  %591 = vst [vmem:[#allocation1 + $0x11] ss:$2 sm:$0xff] %v585_v48 }
  0xdd   : > { %v566_v53 = vld.sshfl [vmem:[#allocation1] sm:$0xff pattern:$0x75316420]  ;;  %v567_v54 = vld.sshfl [vmem:[#allocation1 + $0x8] sm:$0xff pattern:$0x75316420] }
  0xde   : > { %569 = vrot.lane.b32.xlu0 %v566_v53, %s1117_s28  ;;  %589 = vst [vmem:[#allocation1 + $0x1] ss:$2 sm:$0xff] %v519_v39  ;;  %v594_v55 = vld.sshfl [vmem:[#allocation1 + $0x10] sm:$0xff pattern:$0x75316420] }
  0xdf   : > { %540 = vrot.lane.b32.xlu1 %v536_v49, %s1118_s29  ;;  %538 = vrot.lane.b32.xlu2 %v535_v50, %s1118_s29  ;;  %614 = vst [vmem:[#allocation1 + $0x10] ss:$2 sm:$0xff] %v609_v52  ;;  %v644_v49 = vld [vmem:[%s1437_s4] sm:$0xf]  ;;  %v1121_v50 = vmov 0  }
  0xe0   : > { %1102 = vset.pattern.permute.xlu0 %v1121_v50  ;;  %1103 = vset.pattern.permute.xlu2 %v1121_v50 }
  0xe5   : > { %v593_v56 = vld.sshfl [vmem:[#allocation1 + $0x8] sm:$0xff pattern:$0x75316420]  ;;  %v592_v57 = vld.sshfl [vmem:[#allocation1] sm:$0xff pattern:$0x75316420] }
  0xe6   : > { %v617_v58 = vld.sshfl [vmem:[#allocation1 + $0x10] sm:$0xff pattern:$0x75316420]  ;;  %612 = vst [vmem:[#allocation1] ss:$2 sm:$0xff] %v519_v39 }
  0xe7   : > { %571 = vrot.lane.b32.xlu2 %v567_v54, %s1117_s28  ;;  %622 = vrot.lane.b32.xlu0 %v617_v58, %s1119_s30 }
  0xe8   : > { %597 = vrot.lane.b32.xlu1 %v593_v56, %s1120_s8 }
  0xed   : > { %v616_v59 = vld.sshfl [vmem:[#allocation1 + $0x8] sm:$0xff pattern:$0x75316420]  ;;  %v615_v60 = vld.sshfl [vmem:[#allocation1] sm:$0xff pattern:$0x75316420] }
  0xef   : > { %599 = vrot.lane.b32.xlu2 %v594_v55, %s1120_s8  ;;  %620 = vrot.lane.b32.xlu0 %v616_v59, %s1119_s30 }
  0xf0   : > { %595 = vrot.lane.b32.xlu1 %v592_v57, %s1120_s8 }
  0xf7   : > { %446 = vrot.lane.b32.xlu2 %v1233_v32, %s1114_s23  ;;  %618 = vrot.lane.b32.xlu0 %v615_v60, %s1119_s30 }
  0xf8   : > { %420 = vrot.lane.b32.xlu1 %v1229_v28, %s1113_s22 }
  0xff   : > { %450 = vrot.lane.b32.xlu0 %v1235_v34, %s1114_s23 }
 0x107   : > { %647 = vperm.xlu0 %1102, %v644_v49  }
 0x108   : > { %v1262_v63 = vpop.permute.xlu2 %422 }
 0x110   : > { %v1264_v2 = vpop.permute.xlu2 %448 }
 0x118   : > { %v476_v7 = vpop.permute.xlu2 %475 }
 0x121   : > { %v425_v4 = vpop.permute.xlu0 %424 }
 0x122   : > { %v428_v5 = vsel %vm426_vm2, %v1262_v63, %v425_v4 }
 0x123   : > { %v432_v6 = vsel %vm1266_vm3, %v428_v5, 0.0 }
 0x124   : > { %434 = vst [vmem:[#allocation4] sm:$0xf] %v432_v6 }
 0x130   : > { %v474_v11 = vpop.permute.xlu1 %473 }
 0x131   : > { %v478_v12 = vpop.permute.xlu0 %477  ;;  %v574_v13 = vpop.permute.xlu2 %573  ;;  %v480_v14 = vsel %vm479_vm4, %v474_v11, %v476_v7 }
 0x132   : > { %v481_v15 = vsel %vm479_vm4, %v476_v7, %v478_v12  ;;  %v484_v16 = vsel %vm1274_vm5, %v480_v14, 0.0  ;;  %v633_v12 = vld [vmem:[%s1436_s3] sm:$0xf] }
 0x133   : > { %v485_v17 = vsel %vm1278_vm6, %v481_v15, 0.0  ;;  %486 = vst [vmem:[#allocation4 + $0x18] sm:$0xf] %v484_v16 }
 0x134   : > { %487 = vst [vmem:[#allocation4 + $0x10] sm:$0xf] %v485_v17 }
 0x139   : > { %v503_v18 = vpop.permute.xlu1 %502  ;;  %v501_v19 = vpop.permute.xlu0 %500 }
 0x13a   : > { %v506_v20 = vsel %vm504_vm7, %v501_v19, %v503_v18  ;;  %v539_v21 = vpop.permute.xlu2 %538 }
 0x13b   : > { %v510_v22 = vsel %vm1266_vm3, %v506_v20, 0.0 }
 0x13c   : > { %v514_v23 = vrot.slane %v510_v22, 4 }
 0x13e   : > { %518 = vst [vmem:[#allocation4 + $0x10] sm:$0xf0] %v514_v23 }
 0x141   : > { %v499_v25 = vpop.permute.xlu1 %498 }
 0x142   : > { %v505_v26 = vsel %vm504_vm7, %v499_v25, %v501_v19  ;;  %v572_v27 = vpop.permute.xlu2 %571 }
 0x143   : > { %v509_v28 = vsel %vm1291_vm8, %v505_v26, 0.0  ;;  %v577_v29 = vsel %vm575_vm9, %v572_v27, %v574_v13 }
 0x144   : > { %v513_v30 = vrot.slane %v509_v28, 4  ;;  %v581_v31 = vsel %vm1266_vm3, %v577_v29, 0.0 }
 0x145   : > { %583 = vst [vmem:[#allocation4 + $0x20] sm:$0xf] %v581_v31 }
 0x146   : > { %517 = vst [vmem:[#allocation4 + $0x18] sm:$0xf0] %v513_v30 }
 0x149   : > { %v543_v32 = vpop.permute.xlu1 %542 }
 0x14a   : > { %v600_v33 = vpop.permute.xlu2 %599 }
 0x14d   : > { %v636_v11 = vld [vmem:[#allocation4 + $0x18] sm:$0xff] }
 0x150   : > { %v570_v34 = vpop.permute.xlu0 %569 }
 0x151   : > { %v541_v35 = vpop.permute.xlu1 %540  ;;  %v576_v36 = vsel %vm575_vm9, %v570_v34, %v572_v27 }
 0x152   : > { %v545_v37 = vsel %vm544_vm10, %v539_v21, %v541_v35  ;;  %v546_v38 = vsel %vm544_vm10, %v541_v35, %v543_v32  ;;  %v447_v39 = vpop.permute.xlu2 %446  ;;  %v580_v40 = vsel %vm1291_vm8, %v576_v36, 0.0 }
 0x153   : > { %v549_v41 = vsel %vm1274_vm5, %v545_v37, 0.0  ;;  %v550_v42 = vsel %vm1278_vm6, %v546_v38, 0.0  ;;  %v453_v43 = vsel %vm452_vm11, %v447_v39, %v1264_v2  ;;  %582 = vst [vmem:[#allocation4 + $0x8] sm:$0xf] %v580_v40  ;;  %v819_v38 = vld [vmem:[#allocation3 + $0xc] sm:$0xf] }
 0x154   : > { %v553_v44 = vrot.slane %v549_v41, 4  ;;  %v554_v45 = vrot.slane %v550_v42, 4  ;;  %457 = vst [vmem:[#allocation4 + $0x30] sm:$0xf0] %v453_v43  ;;  %v849_v42 = vld [vmem:[#allocation3 + $0xc] sm:$0xf] }
 0x156   : > { %557 = vst [vmem:[#allocation4 + $0x48] sm:$0xf0] %v553_v44 }
 0x157   : > { %558 = vst [vmem:[#allocation4 + $0x28] sm:$0xf0] %v554_v45 }
 0x159   : > { %v623_v46 = vpop.permute.xlu0 %622 }
 0x15a   : > { %v598_v47 = vpop.permute.xlu1 %597 }
 0x15b   : > { %v603_v48 = vsel %vm601_vm12, %v598_v47, %v600_v33 }
 0x15c   : > { %607 = vst [vmem:[#allocation4 + $0x20] sm:$0xf0] %v603_v48  ;;  %v873_v48 = vld [vmem:[#allocation3 + $0xc] sm:$0xf] }
 0x15d   : > { %v638_v8 = vld [vmem:[#allocation4 + $0x48] sm:$0xff] }
 0x15e   : > { %v639_v1 = vld [vmem:[#allocation4 + $0x28] sm:$0xff] }
 0x161   : > { %v621_v51 = vpop.permute.xlu0 %620 }
 0x162   : > { %v596_v52 = vpop.permute.xlu1 %595  ;;  %v626_v53 = vsel %vm624_vm13, %v621_v51, %v623_v46 }
 0x163   : > { %v602_v54 = vsel %vm601_vm12, %v596_v52, %v598_v47  ;;  %v630_v55 = vsel %vm1278_vm6, %v626_v53, 0.0  ;;  %v641_v0 = vld [vmem:[#allocation4 + $0x20] sm:$0xff]  ;;  %v896_v52 = vld [vmem:[#allocation3 + $0xc] sm:$0xf] }
 0x164   : > { %606 = vst [vmem:[#allocation4 + $0x8] sm:$0xf0] %v602_v54 }
 0x165   : > { %632 = vst [vmem:[#allocation4 + $0x38] sm:$0xf] %v630_v55 }
 0x169   : > { %v619_v56 = vpop.permute.xlu0 %618 }
 0x16a   : > { %v421_v57 = vpop.permute.xlu1 %420  ;;  %v625_v58 = vsel %vm624_vm13, %v619_v56, %v621_v51 }
 0x16b   : > { %v427_v59 = vsel %vm426_vm2, %v421_v57, %v1262_v63  ;;  %v629_v60 = vsel %vm1274_vm5, %v625_v58, 0.0  ;;  %v637_v63 = vld [vmem:[#allocation4 + $0x10] sm:$0xff]  ;;  %v640_v7 = vld [vmem:[#allocation4 + $0x8] sm:$0xff] }
 0x16c   : > { %v431_v61 = vsel %vm1291_vm8, %v427_v59, 0.0  ;;  %631 = vst [vmem:[#allocation4 + $0x40] sm:$0xf] %v629_v60  ;;  %v643_v62 = vld [vmem:[#allocation4 + $0x38] sm:$0xf] }
 0x16d   : > { %433 = vst [vmem:[#allocation4 + $0x30] sm:$0xf] %v431_v61  ;;  %1074 = vmatpush.msk.msra.mxu3 %vm368_vm1, %v643_v62 }
 0x16f   : > { %692 = vmatpush.msra.mxu3 %v641_v0 }
 0x171   : > { %693 = vmatpush.msra.mxu3 %v639_v1  ;;  %v451_v4 = vpop.permute.xlu0 %450 }
 0x172   : > { %v454_v5 = vsel %vm452_vm11, %v1264_v2, %v451_v4 }
 0x173   : > { %458 = vst [vmem:[#allocation4] sm:$0xf0] %v454_v5  ;;  %694 = vmatpush.msra.mxu3 %v637_v63  ;;  %v642_v6 = vld [vmem:[#allocation4 + $0x40] sm:$0xf] }
 0x174   : > { %1072 = vmatpush.msk.msra.mxu2 %vm368_vm1, %v642_v6  ;;  %v634_v2 = vld [vmem:[#allocation4 + $0x30] sm:$0xff] }
 0x176   : > { %672 = vmatpush.msra.mxu2 %v640_v7 }
 0x178   : > { %673 = vmatpush.msra.mxu2 %v638_v8 }
 0x179   : > { %v648_v14 = vpop.permute.xlu0 %647 }
 0x17a   : > { %674 = vmatpush.msra.mxu2 %v636_v11  ;;  %v635_v13 = vld [vmem:[#allocation4] sm:$0xff] }
 0x17b   : > { %695 = vmatpush.msra.mxu3 %v635_v13 }
 0x17c   : > { %675 = vmatpush.msra.mxu2 %v634_v2  ;;  %1075 = vmatmul.msk.f32.vlgmr.msra.gmra.mxu3 %vm650_vm14, %v633_v12 }
 0x17d   : > { %1073 = vmatmul.msk.f32.vlgmr.msra.gmra.mxu2 %vm650_vm14, %v633_v12 }
 0x1ff   : > { %v697_v15 = vpop.f32.mrf.mxu3 }
 0x200   : > { %v698_v16 = vadd.f32 %v697_v15, %v648_v14  ;;  %v677_v17 = vpop.f32.mrf.mxu2 }
 0x201   : > { %v678_v18 = vadd.f32 %v677_v17, %v648_v14 }
 0x202   : > { %v701_v19 = vmax.f32 %v698_v16, 0.0 }
 0x203   : > { %v700_v20 = vmax.f32 %v678_v18, 0.0 }
 0x204   : > { %v704_v21 = vrot.slane %v701_v19, 4 }
 0x206   : > { %v1337_v22 = vsel %vm368_vm1, %v700_v20, %v704_v21 }
 0x207   : > { %707 = vst [vmem:[#allocation3 + $0x4] sm:$0xff] %v1337_v22 }
 0x20e   : > { %v708_v23 = vld [vmem:[#allocation3] sm:$0xff]  ;;  %v709_v25 = vld [vmem:[#allocation3 + $0x8] sm:$0xf] }
 0x20f   : > { %712 = vst [vmem:[#allocation1] ss:$2 sm:$0xff] %v708_v23  ;;  %v733_v26 = vld [vmem:[#allocation3 + $0x8] sm:$0xf] }
 0x210   : > { %714 = vst [vmem:[#allocation1 + $0x10] ss:$2 sm:$0xff] %v709_v25  ;;  %v756_v30 = vld [vmem:[#allocation3 + $0x8] sm:$0xf] }
 0x211   : > { %v780_v34 = vld [vmem:[#allocation3 + $0x8] sm:$0xf] }
 0x216   : > { %v1340_v27 = vld.sshfl [vmem:[#allocation1] sm:$0xff pattern:$0x75316420]  ;;  %v716_v28 = vld.sshfl [vmem:[#allocation1 + $0x8] sm:$0xff pattern:$0x75316420] }
 0x217   : > { %737 = vst [vmem:[#allocation1 + $0x1] ss:$2 sm:$0xff] %v708_v23  ;;  %v717_v29 = vld.sshfl [vmem:[#allocation1 + $0x10] sm:$0xff pattern:$0x75316420]  ;;  %720 = vrot.lane.b32.xlu1 %v716_v28, %s1113_s22 }
 0x218   : > { %722 = vrot.lane.b32.xlu2 %v717_v29, %s1113_s22  ;;  %739 = vst [vmem:[#allocation1 + $0x11] ss:$2 sm:$0xff] %v733_v26 }
 0x21e   : > { %v1344_v31 = vld.sshfl [vmem:[#allocation1] sm:$0xff pattern:$0x75316420]  ;;  %v741_v32 = vld.sshfl [vmem:[#allocation1 + $0x8] sm:$0xff pattern:$0x75316420] }
 0x21f   : > { %759 = vst [vmem:[#allocation1] ss:$2 sm:$0xff] %v708_v23  ;;  %v742_v33 = vld.sshfl [vmem:[#allocation1 + $0x10] sm:$0xff pattern:$0x75316420] }
 0x220   : > { %761 = vst [vmem:[#allocation1 + $0x10] ss:$2 sm:$0xff] %v756_v30 }
 0x226   : > { %v762_v35 = vld.sshfl [vmem:[#allocation1] sm:$0xff pattern:$0x75316420]  ;;  %v763_v36 = vld.sshfl [vmem:[#allocation1 + $0x8] sm:$0xff pattern:$0x75316420] }
 0x227   : > { %783 = vst [vmem:[#allocation1] ss:$2 sm:$0xff] %v708_v23  ;;  %v764_v37 = vld.sshfl [vmem:[#allocation1 + $0x10] sm:$0xff pattern:$0x75316420]  ;;  %767 = vrot.lane.b32.xlu1 %v763_v36, %s1115_s26  ;;  %765 = vrot.lane.b32.xlu0 %v762_v35, %s1115_s26 }
 0x228   : > { %769 = vrot.lane.b32.xlu2 %v764_v37, %s1115_s26  ;;  %785 = vst [vmem:[#allocation1 + $0x10] ss:$2 sm:$0xff] %v780_v34 }
 0x22e   : > { %v786_v39 = vld.sshfl [vmem:[#allocation1] sm:$0xff pattern:$0x75316420]  ;;  %v787_v40 = vld.sshfl [vmem:[#allocation1 + $0x8] sm:$0xff pattern:$0x75316420] }
 0x22f   : > { %811 = vst [vmem:[#allocation1] ss:$2 sm:$0xff] %v1337_v22  ;;  %v788_v41 = vld.sshfl [vmem:[#allocation1 + $0x10] sm:$0xff pattern:$0x75316420] }
 0x230   : > { %793 = vrot.lane.b32.xlu0 %v788_v41, %s1116_s27  ;;  %791 = vrot.lane.b32.xlu2 %v787_v40, %s1116_s27  ;;  %824 = vst [vmem:[#allocation1 + $0x10] ss:$2 sm:$0xff] %v819_v38 }
 0x236   : > { %v812_v43 = vld.sshfl [vmem:[#allocation1] sm:$0xff pattern:$0x75316420]  ;;  %v813_v44 = vld.sshfl [vmem:[#allocation1 + $0x8] sm:$0xff pattern:$0x75316420] }
 0x237   : > { %822 = vst [vmem:[#allocation1] ss:$2 sm:$0xff] %v1337_v22  ;;  %v827_v45 = vld.sshfl [vmem:[#allocation1 + $0x10] sm:$0xff pattern:$0x75316420] }
 0x238   : > { %816 = vst [vmem:[#allocation5 + $0x38] sm:$0xf] %v812_v43  ;;  %832 = vrot.lane.b32.xlu2 %v827_v45, %s1118_s29  ;;  %789 = vrot.lane.b32.xlu0 %v786_v39, %s1116_s27 }
 0x239   : > { %817 = vst [vmem:[#allocation5 + $0x8] sm:$0xf] %v813_v44 }
 0x23a   : > { %854 = vst [vmem:[#allocation1 + $0x10] ss:$2 sm:$0xff] %v849_v42 }
 0x23e   : > { %v825_v46 = vld.sshfl [vmem:[#allocation1] sm:$0xff pattern:$0x75316420]  ;;  %v826_v47 = vld.sshfl [vmem:[#allocation1 + $0x8] sm:$0xff pattern:$0x75316420] }
 0x23f   : > { %830 = vrot.lane.b32.xlu1 %v826_v47, %s1118_s29  ;;  %852 = vst [vmem:[#allocation1] ss:$2 sm:$0xff] %v1337_v22 }
 0x241   : > { %v857_v49 = vld.sshfl [vmem:[#allocation1 + $0x10] sm:$0xff pattern:$0x75316420] }
 0x242   : > { %879 = vst [vmem:[#allocation1 + $0x11] ss:$2 sm:$0xff] %v873_v48 }
 0x246   : > { %v856_v50 = vld.sshfl [vmem:[#allocation1 + $0x8] sm:$0xff pattern:$0x75316420]  ;;  %v855_v51 = vld.sshfl [vmem:[#allocation1] sm:$0xff pattern:$0x75316420] }
 0x247   : > { %862 = vrot.lane.b32.xlu1 %v857_v49, %s1117_s28  ;;  %860 = vrot.lane.b32.xlu0 %v856_v50, %s1117_s28  ;;  %877 = vst [vmem:[#allocation1 + $0x1] ss:$2 sm:$0xff] %v1337_v22 }
 0x248   : > { %858 = vrot.lane.b32.xlu2 %v855_v51, %s1117_s28 }
 0x249   : > { %v882_v53 = vld.sshfl [vmem:[#allocation1 + $0x10] sm:$0xff pattern:$0x75316420] }
 0x24a   : > { %901 = vst [vmem:[#allocation1 + $0x10] ss:$2 sm:$0xff] %v896_v52 }
 0x24e   : > { %v881_v54 = vld.sshfl [vmem:[#allocation1 + $0x8] sm:$0xff pattern:$0x75316420]  ;;  %v880_v55 = vld.sshfl [vmem:[#allocation1] sm:$0xff pattern:$0x75316420] }
 0x24f   : > { %828 = vrot.lane.b32.xlu1 %v825_v46, %s1118_s29  ;;  %885 = vrot.lane.b32.xlu0 %v881_v54, %s1120_s8  ;;  %899 = vst [vmem:[#allocation1] ss:$2 sm:$0xff] %v1337_v22 }
 0x251   : > { %v904_v56 = vld.sshfl [vmem:[#allocation1 + $0x10] sm:$0xff pattern:$0x75316420] }
 0x252   : > { %909 = vrot.lane.b32.xlu2 %v904_v56, %s1119_s30 }
 0x256   : > { %v902_v57 = vld.sshfl [vmem:[#allocation1] sm:$0xff pattern:$0x75316420]  ;;  %v903_v58 = vld.sshfl [vmem:[#allocation1 + $0x8] sm:$0xff pattern:$0x75316420] }
 0x257   : > { %887 = vrot.lane.b32.xlu1 %v882_v53, %s1120_s8  ;;  %883 = vrot.lane.b32.xlu0 %v880_v55, %s1120_s8 }
 0x25a   : > { %905 = vrot.lane.b32.xlu2 %v902_v57, %s1119_s30 }
 0x25f   : > { %718 = vrot.lane.b32.xlu0 %v1340_v27, %s1113_s22  ;;  %907 = vrot.lane.b32.xlu1 %v903_v58, %s1119_s30 }
 0x262   : > { %747 = vrot.lane.b32.xlu2 %v742_v33, %s1114_s23 }
 0x267   : > { %745 = vrot.lane.b32.xlu1 %v741_v32, %s1114_s23 }
 0x26a   : > { %933 = vperm.xlu2 %1103, %v930_v3  }
 0x26f   : > { %743 = vrot.lane.b32.xlu1 %v1344_v31, %s1114_s23 }
 0x272   : > { %v723_v59 = vpop.permute.xlu2 %722 }
 0x282   : > { %v770_v0 = vpop.permute.xlu2 %769 }
 0x289   : > { %v721_v60 = vpop.permute.xlu1 %720 }
 0x28a   : > { %v725_v61 = vsel %vm426_vm2, %v721_v60, %v723_v59  ;;  %v792_v8 = vpop.permute.xlu2 %791 }
 0x28b   : > { %v729_v62 = vsel %vm1266_vm3, %v725_v61, 0.0  ;;  %v919_v61 = vld [vmem:[%s1438_s5] sm:$0xf] }
 0x28c   : > { %731 = vst [vmem:[#allocation5] sm:$0xf] %v729_v62 }
 0x292   : > { %v833_v18 = vpop.permute.xlu2 %832 }
 0x299   : > { %v768_v1 = vpop.permute.xlu1 %767  ;;  %v766_v4 = vpop.permute.xlu0 %765 }
 0x29a   : > { %v772_v5 = vsel %vm479_vm4, %v768_v1, %v770_v0  ;;  %v771_v63 = vsel %vm479_vm4, %v766_v4, %v768_v1 }
 0x29b   : > { %v776_v6 = vsel %vm1278_vm6, %v772_v5, 0.0  ;;  %v775_v7 = vsel %vm1274_vm5, %v771_v63, 0.0 }
 0x29c   : > { %778 = vst [vmem:[#allocation5 + $0x40] sm:$0xf] %v776_v6 }
 0x29d   : > { %777 = vst [vmem:[#allocation5 + $0x10] sm:$0xf] %v775_v7 }
 0x2a2   : > { %v794_v11 = vpop.permute.xlu0 %793  ;;  %v859_v23 = vpop.permute.xlu2 %858 }
 0x2a3   : > { %v796_v12 = vsel %vm504_vm7, %v792_v8, %v794_v11 }
 0x2a4   : > { %v800_v13 = vsel %vm1266_vm3, %v796_v12, 0.0 }
 0x2a5   : > { %v804_v2 = vrot.slane %v800_v13, 4 }
 0x2a7   : > { %808 = vst [vmem:[#allocation5 + $0x40] sm:$0xf0] %v804_v2 }
 0x2aa   : > { %v790_v14 = vpop.permute.xlu0 %789 }
 0x2ab   : > { %v795_v15 = vsel %vm504_vm7, %v790_v14, %v792_v8 }
 0x2ac   : > { %v799_v16 = vsel %vm1291_vm8, %v795_v15, 0.0  ;;  %v910_v36 = vpop.permute.xlu2 %909 }
 0x2ad   : > { %v803_v17 = vrot.slane %v799_v16, 4 }
 0x2ae   : > { %v923_v59 = vld [vmem:[#allocation5 + $0x40] sm:$0xff] }
 0x2af   : > { %807 = vst [vmem:[#allocation5 + $0x10] sm:$0xf0] %v803_v17 }
 0x2b1   : > { %v831_v19 = vpop.permute.xlu1 %830 }
 0x2b2   : > { %v835_v20 = vsel %vm544_vm10, %v831_v19, %v833_v18 }
 0x2b3   : > { %v839_v21 = vsel %vm1278_vm6, %v835_v20, 0.0 }
 0x2b4   : > { %v843_v22 = vrot.slane %v839_v21, 4  ;;  %v906_v41 = vpop.permute.xlu2 %905 }
 0x2b6   : > { %847 = vst [vmem:[#allocation5 + $0x8] sm:$0xf0] %v843_v22  ;;  %v922_v58 = vld [vmem:[#allocation5 + $0x10] sm:$0xff] }
 0x2b9   : > { %v863_v25 = vpop.permute.xlu1 %862  ;;  %v861_v26 = vpop.permute.xlu0 %860 }
 0x2ba   : > { %v864_v27 = vsel %vm575_vm9, %v859_v23, %v861_v26  ;;  %v865_v28 = vsel %vm575_vm9, %v861_v26, %v863_v25 }
 0x2bb   : > { %v868_v29 = vsel %vm1291_vm8, %v864_v27, 0.0  ;;  %v869_v30 = vsel %vm1266_vm3, %v865_v28, 0.0 }
 0x2bc   : > { %870 = vst [vmem:[#allocation5 + $0x30] sm:$0xf] %v868_v29  ;;  %v748_v50 = vpop.permute.xlu2 %747 }
 0x2bd   : > { %871 = vst [vmem:[#allocation5 + $0x18] sm:$0xf] %v869_v30  ;;  %v925_v55 = vld [vmem:[#allocation5 + $0x8] sm:$0xff] }
 0x2c1   : > { %v829_v31 = vpop.permute.xlu1 %828  ;;  %v886_v32 = vpop.permute.xlu0 %885 }
 0x2c2   : > { %v834_v33 = vsel %vm544_vm10, %v829_v31, %v831_v19 }
 0x2c3   : > { %v838_v34 = vsel %vm1274_vm5, %v834_v33, 0.0 }
 0x2c4   : > { %v842_v35 = vrot.slane %v838_v34, 4  ;;  %v934_v0 = vpop.permute.xlu2 %933 }
 0x2c6   : > { %846 = vst [vmem:[#allocation5 + $0x38] sm:$0xf0] %v842_v35 }
 0x2c9   : > { %v888_v37 = vpop.permute.xlu1 %887  ;;  %v884_v38 = vpop.permute.xlu0 %883 }
 0x2ca   : > { %v890_v39 = vsel %vm601_vm12, %v886_v32, %v888_v37  ;;  %v889_v40 = vsel %vm601_vm12, %v884_v38, %v886_v32 }
 0x2cb   : > { %894 = vst [vmem:[#allocation5 + $0x18] sm:$0xf0] %v890_v39 }
 0x2cc   : > { %893 = vst [vmem:[#allocation5 + $0x30] sm:$0xf0] %v889_v40 }
 0x2cd   : > { %v924_v10 = vld [vmem:[#allocation5 + $0x38] sm:$0xff] }
 0x2d1   : > { %v719_v42 = vpop.permute.xlu0 %718  ;;  %v908_v43 = vpop.permute.xlu1 %907 }
 0x2d2   : > { %v724_v44 = vsel %vm426_vm2, %v719_v42, %v721_v60  ;;  %v911_v45 = vsel %vm624_vm13, %v906_v41, %v908_v43  ;;  %v912_v46 = vsel %vm624_vm13, %v908_v43, %v910_v36  ;;  %v927_v9 = vld [vmem:[#allocation5 + $0x18] sm:$0xff] }
 0x2d3   : > { %v728_v47 = vsel %vm1291_vm8, %v724_v44, 0.0  ;;  %v915_v48 = vsel %vm1274_vm5, %v911_v45, 0.0  ;;  %v916_v49 = vsel %vm1278_vm6, %v912_v46, 0.0  ;;  %v926_v24 = vld [vmem:[#allocation5 + $0x30] sm:$0xff] }
 0x2d4   : > { %730 = vst [vmem:[#allocation5 + $0x48] sm:$0xf] %v728_v47 }
 0x2d5   : > { %917 = vst [vmem:[#allocation5 + $0x28] sm:$0xf] %v915_v48 }
 0x2d6   : > { %918 = vst [vmem:[#allocation5 + $0x20] sm:$0xf] %v916_v49 }
 0x2d9   : > { %v746_v51 = vpop.permute.xlu1 %745 }
 0x2da   : > { %v750_v52 = vsel %vm452_vm11, %v746_v51, %v748_v50 }
 0x2db   : > { %754 = vst [vmem:[#allocation5] sm:$0xf0] %v750_v52 }
 0x2dc   : > { %v928_v53 = vld [vmem:[#allocation5 + $0x28] sm:$0xf] }
 0x2dd   : > { %1076 = vmatpush.msk.msrb.mxu2 %vm368_vm1, %v928_v53  ;;  %v929_v54 = vld [vmem:[#allocation5 + $0x20] sm:$0xf] }
 0x2de   : > { %1078 = vmatpush.msk.msrb.mxu3 %vm368_vm1, %v929_v54 }
 0x2df   : > { %957 = vmatpush.msrb.mxu2 %v926_v24 }
 0x2e0   : > { %977 = vmatpush.msrb.mxu3 %v927_v9 }
 0x2e1   : > { %958 = vmatpush.msrb.mxu2 %v924_v10  ;;  %v744_v56 = vpop.permute.xlu1 %743 }
 0x2e2   : > { %978 = vmatpush.msrb.mxu3 %v925_v55  ;;  %v749_v57 = vsel %vm452_vm11, %v744_v56, %v746_v51  ;;  %v921_v60 = vld [vmem:[#allocation5] sm:$0xff] }
 0x2e3   : > { %753 = vst [vmem:[#allocation5 + $0x48] sm:$0xf0] %v749_v57  ;;  %959 = vmatpush.msrb.mxu2 %v922_v58 }
 0x2e4   : > { %979 = vmatpush.msrb.mxu3 %v923_v59 }
 0x2e6   : > { %980 = vmatpush.msrb.mxu3 %v921_v60 }
 0x2e7   : > { %1079 = vmatmul.msk.f32.vlgmr.msrb.gmra.mxu3 %vm650_vm14, %v919_v61 }
 0x2ea   : > { %v920_v62 = vld [vmem:[#allocation5 + $0x48] sm:$0xff] }
 0x2eb   : > { %960 = vmatpush.msrb.mxu2 %v920_v62 }
 0x2ec   : > { %1077 = vmatmul.msk.f32.vlgmr.msrb.gmra.mxu2 %vm650_vm14, %v919_v61 }
 0x36a   : > { %v982_v1 = vpop.f32.mrf.mxu3 }
 0x36b   : > { %v983_v4 = vadd.f32 %v982_v1, %v934_v0 }
 0x36d   : > { %v986_v5 = vmax.f32 %v983_v4, 0.0 }
 0x36f   : > { %v962_v63 = vpop.f32.mrf.mxu2  ;;  %v989_v6 = vrot.slane %v986_v5, 4 }
 0x370   : > { %v963_v7 = vadd.f32 %v962_v63, %v934_v0 }
 0x372   : > { %v985_v8 = vmax.f32 %v963_v7, 0.0 }
 0x374   : > { %v990_v11 = vsel %vm368_vm1, %v985_v8, %v989_v6 }
 0x375   : > { %992 = vst [vmem:[%s295_s20] sm:$0xff] %v990_v11 }
 0x376 PF: > { %s17_s24 = sadd.s32 1, %s1110_s24  }
 0x377   : > { %p14_p4 = scmp.ge.s32.totalorder %s17_s24, 4  }
 0x379   :  { %16 = sbr.rel (!%p14_p4) target bundleno = 1 (0x1), region = 101 }

</bundles_post_ra>
